<compile_context>
chip_gen: v7x
topology: tpu7x:2x2x1
jax: 0.10.0
libtpu: 0.0.40
codegen_flags: <defaults>
</compile_context>

<pallas_src>
import functools

import jax
import jax.numpy as jnp
from jax.experimental import pallas as pl
from jax.experimental.pallas import tpu as pltpu


def _round_up(x, m):
    return (x + m - 1) // m * m


def _chunk_value_kernel(obs_ref, w1_ref, b1_ref, w2_ref, b2_ref,
                        wv_ref, bv_ref, out_ref, *, compute_dtype):
    # Fused 2-layer MLP (Tanh, activate_last=True) + padded value head for one
    # batch tile. All matmuls accumulate in f32 on the MXU; operands are in
    # `compute_dtype` (bf16 by default).
    x = obs_ref[...]  # already in compute_dtype (cast in wrapper)

    # Layer 1: Linear -> Tanh
    h1 = jnp.dot(x, w1_ref[...], preferred_element_type=jnp.float32)
    h1 = jnp.tanh(h1 + b1_ref[...])                       # f32 on VPU/EUP

    # Layer 2: Linear -> Tanh
    h2 = jnp.dot(h1.astype(compute_dtype), w2_ref[...],
                 preferred_element_type=jnp.float32)
    h2 = jnp.tanh(h2 + b2_ref[...])

    # Value head: Linear(H2, chunk_size) zero-padded to a lane-dense 128 cols.
    v = jnp.dot(h2.astype(compute_dtype), wv_ref[...],
                preferred_element_type=jnp.float32)
    out_ref[...] = (v + bv_ref[...]).astype(out_ref.dtype)


def chunk_value_forward(obs, params, *, batch_tile=None,
                        compute_dtype=jnp.bfloat16):
    """obs: (batch, obs_dim) -> values: (batch, chunk_size)."""
    w1, b1, w2, b2, wv, bv = params
    B, obs_dim = obs.shape
    H1 = w1.shape[1]
    H2 = w2.shape[1]
    chunk_size = wv.shape[1]

    # ---- lane-dense value head: pad output columns to a multiple of 128 ----
    Cp = _round_up(chunk_size, 128)
    if Cp != chunk_size:
        wv = jnp.pad(wv, ((0, 0), (0, Cp - chunk_size)))
        bv = jnp.pad(bv, ((0, 0), (0, Cp - chunk_size)))

    # ---- batch tiling: big tiles, pad ragged batches instead of asserting ----
    if batch_tile is None:
        # One grid step for small batches; 256-row tiles (MXU-width on
        # v6e/v7x, 2x the v5e systolic dim) for large ones.
        batch_tile = min(_round_up(B, 8), 256)
    Bp = _round_up(B, batch_tile)
    obs_p = obs if Bp == B else jnp.pad(obs, ((0, Bp - B), (0, 0)))

    # ---- dtypes: bf16 matmul operands, f32 biases / accumulation ----
    obs_c = obs_p.astype(compute_dtype)
    w1c = w1.astype(compute_dtype)
    w2c = w2.astype(compute_dtype)
    wvc = wv.astype(compute_dtype)
    b1f = b1.astype(jnp.float32)
    b2f = b2.astype(jnp.float32)
    bvf = bv.astype(jnp.float32)

    grid = (Bp // batch_tile,)
    full = lambda shape: pl.BlockSpec(shape, lambda i: (0, 0))

    out = pl.pallas_call(
        functools.partial(_chunk_value_kernel, compute_dtype=compute_dtype),
        out_shape=jax.ShapeDtypeStruct((Bp, Cp), obs.dtype),
        grid_spec=pltpu.PrefetchScalarGridSpec(
            num_scalar_prefetch=0,
            grid=grid,
            in_specs=[
                pl.BlockSpec((batch_tile, obs_dim), lambda i: (i, 0)),  # obs tile
                full((obs_dim, H1)),   # W1
                full((1, H1)),         # b1
                full((H1, H2)),        # W2
                full((1, H2)),         # b2
                full((H2, Cp)),        # Wv (padded, lane-dense)
                full((1, Cp)),         # bv (padded)
            ],
            out_specs=pl.BlockSpec((batch_tile, Cp), lambda i: (i, 0)),
        ),
        compiler_params=pltpu.CompilerParams(
            dimension_semantics=("parallel",)),   # shards grid across TCs on v7x
    )(obs_c, w1c, b1f, w2c, b2f, wvc, bvf)

    return out[:B, :chunk_size]


def init_params(key, obs_dim, hidden_sizes, chunk_size):
    """Deterministic synthetic parameters (shapes match the PyTorch module)."""
    sizes = [obs_dim] + list(hidden_sizes)
    keys = jax.random.split(key, len(sizes))
    params = []
    for li, (fan_in, fan_out) in enumerate(zip(sizes[:-1], sizes[1:])):
        w = jax.random.normal(keys[li], (fan_in, fan_out), jnp.float32) / jnp.sqrt(fan_in)
        b = jnp.zeros((1, fan_out), jnp.float32)
        params += [w, b]
    wv = jax.random.normal(keys[-1], (sizes[-1], chunk_size), jnp.float32) / jnp.sqrt(sizes[-1])
    bv = jnp.zeros((1, chunk_size), jnp.float32)
    params += [wv, bv]
    return tuple(params)


def reference_forward(obs, params):
    w1, b1, w2, b2, wv, bv = params
    h = jnp.tanh(obs @ w1 + b1)
    h = jnp.tanh(h @ w2 + b2)
    return h @ wv + bv


if __name__ == "__main__":
    key = jax.random.PRNGKey(0)
    k_obs, k_par = jax.random.split(key)

    batch = 16
    obs_dim = 32
    hidden_sizes = [64, 64]
    chunk_size = 8

    obs = jax.random.normal(k_obs, (batch, obs_dim), jnp.float32)
    params = init_params(k_par, obs_dim, hidden_sizes, chunk_size)
    ref = reference_forward(obs, params)

    # Exact-precision path (f32 operands) — tight tolerance vs reference.
    vals_f32 = chunk_value_forward(obs, params, compute_dtype=jnp.float32)
    vals_f32 = jax.block_until_ready(vals_f32)
    assert vals_f32.shape == (batch, chunk_size)
    assert jnp.allclose(vals_f32, ref, atol=1e-5, rtol=1e-5), "f32 mismatch vs reference"

    # Default fast path (bf16 matmul operands, f32 accumulation).
    vals_bf16 = chunk_value_forward(obs, params)
    vals_bf16 = jax.block_until_ready(vals_bf16)
    assert vals_bf16.shape == (batch, chunk_size)
    assert jnp.allclose(vals_bf16, ref, atol=5e-2, rtol=5e-2), "bf16 mismatch vs reference"

    print("KERNEL_OK")
</pallas_src>

<mosaic_0001>
module attributes {stable_mosaic.version = 11 : i64} {
  func.func @_chunk_value_kernel(%arg0: i32, %arg1: memref<16x32xf32, #tpu.memory_space<vmem>>, %arg2: memref<32x64xf32, #tpu.memory_space<vmem>>, %arg3: memref<1x64xf32, #tpu.memory_space<vmem>>, %arg4: memref<64x64xf32, #tpu.memory_space<vmem>>, %arg5: memref<1x64xf32, #tpu.memory_space<vmem>>, %arg6: memref<64x128xf32, #tpu.memory_space<vmem>>, %arg7: memref<1x128xf32, #tpu.memory_space<vmem>>, %arg8: memref<16x128xf32, #tpu.memory_space<vmem>>) attributes {dimension_semantics = [#tpu.dimension_semantics<parallel>], iteration_bounds = array<i64: 1>, scalar_prefetch = 0 : i64, scratch_operands = 0 : i64, tpu.core_type = #tpu.core_type<tc>, window_params = [{transform_indices = @transform_0, window_bounds = array<i64: 16, 32>}, {pipeline_mode = #tpu.pipeline_mode<synchronous>, transform_indices = @transform_1, window_bounds = array<i64: 32, 64>}, {pipeline_mode = #tpu.pipeline_mode<synchronous>, transform_indices = @transform_2, window_bounds = array<i64: 1, 64>}, {pipeline_mode = #tpu.pipeline_mode<synchronous>, transform_indices = @transform_3, window_bounds = array<i64: 64, 64>}, {pipeline_mode = #tpu.pipeline_mode<synchronous>, transform_indices = @transform_4, window_bounds = array<i64: 1, 64>}, {pipeline_mode = #tpu.pipeline_mode<synchronous>, transform_indices = @transform_5, window_bounds = array<i64: 64, 128>}, {pipeline_mode = #tpu.pipeline_mode<synchronous>, transform_indices = @transform_6, window_bounds = array<i64: 1, 128>}, {transform_indices = @transform_7, window_bounds = array<i64: 16, 128>}]} {
    %c0 = arith.constant 0 : index
    %c0_0 = arith.constant 0 : index
    %0 = vector.load %arg1[%c0, %c0_0] : memref<16x32xf32, #tpu.memory_space<vmem>>, vector<16x32xf32>
    %c0_1 = arith.constant 0 : index
    %c0_2 = arith.constant 0 : index
    %1 = vector.load %arg2[%c0_1, %c0_2] : memref<32x64xf32, #tpu.memory_space<vmem>>, vector<32x64xf32>
    %cst = arith.constant dense<0.000000e+00> : vector<16x64xf32>
    %2 = tpu.matmul %0, %1, %cst {dimension_numbers = #tpu.dot_dimension_numbers<[1], [0], [0], [1], [0, 0, 1, 1], [], []>} : vector<16x32xf32>, vector<32x64xf32>, vector<16x64xf32> -> vector<16x64xf32>
    %c0_3 = arith.constant 0 : index
    %c0_4 = arith.constant 0 : index
    %3 = vector.load %arg3[%c0_3, %c0_4] : memref<1x64xf32, #tpu.memory_space<vmem>>, vector<1x64xf32>
    %4 = vector.broadcast %3 : vector<1x64xf32> to vector<16x64xf32>
    %5 = arith.addf %2, %4 : vector<16x64xf32>
    %6 = math.tanh %5 : vector<16x64xf32>
    %c0_5 = arith.constant 0 : index
    %c0_6 = arith.constant 0 : index
    %7 = vector.load %arg4[%c0_5, %c0_6] : memref<64x64xf32, #tpu.memory_space<vmem>>, vector<64x64xf32>
    %cst_7 = arith.constant dense<0.000000e+00> : vector<16x64xf32>
    %8 = tpu.matmul %6, %7, %cst_7 {dimension_numbers = #tpu.dot_dimension_numbers<[1], [0], [0], [1], [0, 0, 1, 1], [], []>} : vector<16x64xf32>, vector<64x64xf32>, vector<16x64xf32> -> vector<16x64xf32>
    %c0_8 = arith.constant 0 : index
    %c0_9 = arith.constant 0 : index
    %9 = vector.load %arg5[%c0_8, %c0_9] : memref<1x64xf32, #tpu.memory_space<vmem>>, vector<1x64xf32>
    %10 = vector.broadcast %9 : vector<1x64xf32> to vector<16x64xf32>
    %11 = arith.addf %8, %10 : vector<16x64xf32>
    %12 = math.tanh %11 : vector<16x64xf32>
    %c0_10 = arith.constant 0 : index
    %c0_11 = arith.constant 0 : index
    %13 = vector.load %arg6[%c0_10, %c0_11] : memref<64x128xf32, #tpu.memory_space<vmem>>, vector<64x128xf32>
    %cst_12 = arith.constant dense<0.000000e+00> : vector<16x128xf32>
    %14 = tpu.matmul %12, %13, %cst_12 {dimension_numbers = #tpu.dot_dimension_numbers<[1], [0], [0], [1], [0, 0, 1, 1], [], []>} : vector<16x64xf32>, vector<64x128xf32>, vector<16x128xf32> -> vector<16x128xf32>
    %c0_13 = arith.constant 0 : index
    %c0_14 = arith.constant 0 : index
    %15 = vector.load %arg7[%c0_13, %c0_14] : memref<1x128xf32, #tpu.memory_space<vmem>>, vector<1x128xf32>
    %16 = vector.broadcast %15 : vector<1x128xf32> to vector<16x128xf32>
    %17 = arith.addf %14, %16 : vector<16x128xf32>
    %c0_15 = arith.constant 0 : index
    %c0_16 = arith.constant 0 : index
    %18 = vector.load %arg8[%c0_15, %c0_16] : memref<16x128xf32, #tpu.memory_space<vmem>>, vector<16x128xf32>
    tpu.vector_store %arg8[%c0_15, %c0_16], %17 {strides = array<i32>} : memref<16x128xf32, #tpu.memory_space<vmem>>, vector<16x128xf32>,
    return
  }
  func.func @transform_0(%arg0: i32) -> (i32, i32) {
    %c0_i32 = arith.constant 0 : i32
    %c0_i32_0 = arith.constant 0 : i32
    return %arg0, %c0_i32 : i32, i32
  }
  func.func @transform_1(%arg0: i32) -> (i32, i32) {
    %c0_i32 = arith.constant 0 : i32
    %c0_i32_0 = arith.constant 0 : i32
    %c0_i32_1 = arith.constant 0 : i32
    return %c0_i32, %c0_i32_0 : i32, i32
  }
  func.func @transform_2(%arg0: i32) -> (i32, i32) {
    %c0_i32 = arith.constant 0 : i32
    %c0_i32_0 = arith.constant 0 : i32
    %c0_i32_1 = arith.constant 0 : i32
    return %c0_i32, %c0_i32_0 : i32, i32
  }
  func.func @transform_3(%arg0: i32) -> (i32, i32) {
    %c0_i32 = arith.constant 0 : i32
    %c0_i32_0 = arith.constant 0 : i32
    %c0_i32_1 = arith.constant 0 : i32
    return %c0_i32, %c0_i32_0 : i32, i32
  }
  func.func @transform_4(%arg0: i32) -> (i32, i32) {
    %c0_i32 = arith.constant 0 : i32
    %c0_i32_0 = arith.constant 0 : i32
    %c0_i32_1 = arith.constant 0 : i32
    return %c0_i32, %c0_i32_0 : i32, i32
  }
  func.func @transform_5(%arg0: i32) -> (i32, i32) {
    %c0_i32 = arith.constant 0 : i32
    %c0_i32_0 = arith.constant 0 : i32
    %c0_i32_1 = arith.constant 0 : i32
    return %c0_i32, %c0_i32_0 : i32, i32
  }
  func.func @transform_6(%arg0: i32) -> (i32, i32) {
    %c0_i32 = arith.constant 0 : i32
    %c0_i32_0 = arith.constant 0 : i32
    %c0_i32_1 = arith.constant 0 : i32
    return %c0_i32, %c0_i32_0 : i32, i32
  }
  func.func @transform_7(%arg0: i32) -> (i32, i32) {
    %c0_i32 = arith.constant 0 : i32
    %c0_i32_0 = arith.constant 0 : i32
    return %arg0, %c0_i32 : i32, i32
  }
}

</mosaic_0001>

<bundles_post_ra>
// kernel: tpu_custom_call.1
= control target key start
LH: loop header
LB: loop body
LE: loop exit
PB: predicated region body
PF: predicated region fallthrough
CT: control target
= control target key end

     0   :  { %12 = vsyncpa [#allocation3], 0  ;;  %s801_s0 = inlined_call_operand.hbm [shape: f32[16,32], index: 0, kind: input, shape index: {}]   ;;  %s802_s1 = inlined_call_operand.hbm [shape: f32[32,64], index: 1, kind: input, shape index: {}]   ;;  %s803_s2 = inlined_call_operand.vmem [shape: f32[1,64], index: 2, kind: input, shape index: {}]   ;;  %s804_s3 = inlined_call_operand.hbm [shape: f32[64,64], index: 3, kind: input, shape index: {}]   ;;  %s805_s4 = inlined_call_operand.vmem [shape: f32[1,64], index: 4, kind: input, shape index: {}]   ;;  %s806_s5 = inlined_call_operand.hbm [shape: f32[64,128], index: 5, kind: input, shape index: {}]   ;;  %s807_s6 = inlined_call_operand.vmem [shape: f32[1,128], index: 6, kind: input, shape index: {}]   ;;  %s808_s7 = inlined_call_operand.hbm [shape: f32[16,128], index: 7, kind: output, shape index: {}]  }
   0x1   :  { %13 = vsyncpa [#allocation6], 0 }
   0x2   :  { %14 = vsyncpa [#allocation9], 0 }
   0x3   :  { %15 = vsyncpa [#allocation4], 0  ;;  %s652_s24 = smov [#allocation5]   ;;  %s653_s26 = smov [#allocation2]  }
   0x4   :  { %s33_s25 = sshll.u32 %s652_s24, 4  ;;  %s21_s27 = sshll.u32 %s653_s26, 4  ;;  %s34_s25 = int_to_ptr.vmem [resolvable:$true] %s33_s25  ;;  %s699_s27 = int_to_ptr.vmem [resolvable:$true] %s21_s27 }
   0x5   :  { %s534_s30 = scalar_lea.hbm %s802_s1, 512 }
   0x6   :  { %p535_p0 = scmp.ne.s32.totalorder %s802_s1, %s534_s30  ;;  %p538_p1 = scmp.lt.u32.totalorder %s534_s30, %s802_s1 }
   0x8   :  { %p540_p2 = pnand %p538_p1, %p535_p0 }
   0xa   :  { %543 = shalt.err (!%p540_p2)
}
   0xb   :  { %s544_s12 = scalar_lea.vmem %s34_s25, 512  ;;  %p549_p4 = scmp.lt.s32.totalorder %s34_s25, %s34_s25 }
   0xc   :  { %p545_p3 = scmp.ne.s32.totalorder %s34_s25, %s544_s12  ;;  %p550_p5 = scmp.lt.s32.totalorder %s544_s12, %s544_s12 }
   0xe   :  { %p551_p6 = por %p550_p5, %p549_p4 }
  0x10   :  { %p552_p7 = pnand %p551_p6, %p545_p3 }
  0x12   :  { %555 = shalt.err (!%p552_p7)
}
  0x13   :  { %s654_s13 = smov 128   ;;  %s655_s14 = smov 8  }
  0x14   :  { %39 = dma.hbm_to_vmem [thread:$0]  %s802_s1, 512, %s34_s25, [#allocation6], %s654_s13, %s654_s13, %s655_s14  }
  0x15   :  { %s556_s19 = scalar_lea.hbm %s801_s0, 256 }
  0x16   :  { %p557_p8 = scmp.ne.s32.totalorder %s801_s0, %s556_s19  ;;  %p560_p9 = scmp.lt.u32.totalorder %s556_s19, %s801_s0 }
  0x18   :  { %p562_p10 = pnand %p560_p9, %p557_p8 }
  0x1a   :  { %565 = shalt.err (!%p562_p10)
}
  0x1b   :  { %s566_s24 = scalar_lea.vmem %s699_s27, 256  ;;  %p571_p12 = scmp.lt.s32.totalorder %s699_s27, %s699_s27 }
  0x1c   :  { %p567_p11 = scmp.ne.s32.totalorder %s699_s27, %s566_s24  ;;  %p572_p13 = scmp.lt.s32.totalorder %s566_s24, %s566_s24 }
  0x1e   :  { %p573_p0 = por %p572_p13, %p571_p12 }
  0x20   :  { %p574_p1 = pnand %p573_p0, %p567_p11 }
  0x22   :  { %577 = shalt.err (!%p574_p1)
}
  0x23   :  { %27 = dma.hbm_to_vmem [thread:$0]  %s801_s0, 256, %s699_s27, [#allocation3], %s654_s13, %s654_s13, %s655_s14  }
  0x24   :  { %s656_s26 = smov [#allocation7]   ;;  %s657_s29 = smov [#allocation8]  }
  0x25   :  { %s47_s28 = sshll.u32 %s656_s26, 4  ;;  %s61_s30 = sshll.u32 %s657_s29, 4  ;;  %s48_s28 = int_to_ptr.vmem [resolvable:$true] %s47_s28  ;;  %s736_s30 = int_to_ptr.vmem [resolvable:$true] %s61_s30 }
  0x26   :  { %s578_s10 = scalar_lea.hbm %s804_s3, 1024 }
  0x27   :  { %p579_p2 = scmp.ne.s32.totalorder %s804_s3, %s578_s10  ;;  %p582_p3 = scmp.lt.u32.totalorder %s578_s10, %s804_s3 }
  0x29   :  { %p584_p4 = pnand %p582_p3, %p579_p2 }
  0x2b   :  { %587 = shalt.err (!%p584_p4)
}
  0x2c   :  { %s588_s0 = scalar_lea.vmem %s48_s28, 1024  ;;  %p593_p6 = scmp.lt.s32.totalorder %s48_s28, %s48_s28 }
  0x2d   :  { %p589_p5 = scmp.ne.s32.totalorder %s48_s28, %s588_s0  ;;  %p594_p7 = scmp.lt.s32.totalorder %s588_s0, %s588_s0 }
  0x2f   :  { %p595_p8 = por %p594_p7, %p593_p6 }
  0x31   :  { %p596_p9 = pnand %p595_p8, %p589_p5 }
  0x33   :  { %599 = shalt.err (!%p596_p9)
}
  0x34   :  { %53 = dma.hbm_to_vmem [thread:$0]  %s804_s3, 1024, %s48_s28, [#allocation6], %s654_s13, %s654_s13, %s655_s14  }
  0x35   :  { %s600_s20 = scalar_lea.hbm %s806_s5, 1024 }
  0x36   :  { %p601_p10 = scmp.ne.s32.totalorder %s806_s5, %s600_s20  ;;  %p604_p11 = scmp.lt.u32.totalorder %s600_s20, %s806_s5 }
  0x38   :  { %p606_p12 = pnand %p604_p11, %p601_p10 }
  0x3a   :  { %609 = shalt.err (!%p606_p12)
}
  0x3b   :  { %s610_s1 = scalar_lea.vmem %s736_s30, 1024  ;;  %p615_p0 = scmp.lt.s32.totalorder %s736_s30, %s736_s30 }
  0x3c   :  { %p611_p13 = scmp.ne.s32.totalorder %s736_s30, %s610_s1  ;;  %p616_p1 = scmp.lt.s32.totalorder %s610_s1, %s610_s1 }
  0x3e   :  { %p617_p2 = por %p616_p1, %p615_p0 }
  0x40   :  { %p618_p3 = pnand %p617_p2, %p611_p13 }
  0x42   :  { %621 = shalt.err (!%p618_p3)
}
  0x43   :  { %67 = dma.hbm_to_vmem [thread:$0]  %s806_s5, 1024, %s736_s30, [#allocation9], %s654_s13, %s654_s13, %s655_s14  }
  0x44   :  { %644 = dma.done.wait [#allocation3], 256  }
  0x45   :  { %645 = vsyncadd [#allocation3], 4294967040 }
  0x46   :  { %646 = dma.done.wait [#allocation6], 1536  }
  0x47   :  { %647 = vsyncadd [#allocation6], 4294965760 }
  0x48   :  { %648 = dma.done.wait [#allocation9], 1024  }
  0x49   :  { %649 = vsyncadd [#allocation9], 4294966272  ;;  %vm95_vm0 = vcmask 261120   ;;  %v84_v0 = vld [vmem:[#allocation5] sm:$0xff]  ;;  %v85_v1 = vld [vmem:[#allocation5 + $0x8] sm:$0xff]  ;;  %vm194_vm1 = vcmask 523264  }
  0x4a   :  { %v86_v2 = vld [vmem:[#allocation5 + $0x10] sm:$0xff]  ;;  %v479_v3 = vpack.c.bf16 %v85_v1, %v84_v0  ;;  %v87_v4 = vld [vmem:[#allocation5 + $0x18] sm:$0xff]  ;;  %v179_v8 = vld [vmem:[#allocation7] sm:$0xff]  ;;  %s658_s8 = smov [#allocation10]  }
  0x4b   :  { %v82_v5 = vld [vmem:[#allocation2] sm:$0xff]  ;;  %v483_v6 = vpack.c.bf16 %v87_v4, %v86_v2  ;;  %v83_v7 = vld [vmem:[#allocation2 + $0x8] sm:$0xff]  ;;  %v180_v9 = vld [vmem:[#allocation7 + $0x8] sm:$0xff]  ;;  %s381_s9 = sshll.u32 %s658_s8, 4  ;;  %s382_s9 = int_to_ptr.vmem [resolvable:$true] %s381_s9 }
  0x4c   :  { %438 = vmatprep.mubr.msk.f32.mxu0 %vm95_vm0, %v82_v5  ;;  %480 = vmatprep.subr.bf16.mxu0 %v479_v3  ;;  %v487_v10 = vpack.c.bf16 %v180_v9, %v179_v8  ;;  %v181_v11 = vld [vmem:[#allocation7 + $0x10] sm:$0xff]  ;;  %v182_v12 = vld [vmem:[#allocation7 + $0x18] sm:$0xff]  ;;  %v183_v14 = vld [vmem:[#allocation7 + $0x20] sm:$0xff]  ;;  %p627_p5 = scmp.lt.s32.totalorder %s382_s9, %s382_s9 }
  0x4d   :  { %482 = vmatpush3.bf16.msra.mxu0 %v479_v3  ;;  %v491_v13 = vpack.c.bf16 %v182_v12, %v181_v11  ;;  %v184_v15 = vld [vmem:[#allocation7 + $0x28] sm:$0xff]  ;;  %v185_v16 = vld [vmem:[#allocation7 + $0x30] sm:$0xff]  ;;  %v186_v18 = vld [vmem:[#allocation7 + $0x38] sm:$0xff] }
  0x4e   :  { %484 = vmatprep.subr.bf16.mxu0 %v483_v6  ;;  %488 = vmatprep.subr.bf16.mxu1 %v487_v10  ;;  %v495_v17 = vpack.c.bf16 %v184_v15, %v183_v14  ;;  %v499_v19 = vpack.c.bf16 %v186_v18, %v185_v16  ;;  %v395_v20 = vld [vmem:[%s803_s2] ss:$0 sm:$0xff]  ;;  %v278_v27 = vld [vmem:[#allocation8] sm:$0xff]  ;;  %v279_v28 = vld [vmem:[#allocation8 + $0x8] sm:$0xff] }
  0x4f   :  { %490 = vmatpush3.bf16.msra.mxu1 %v487_v10  ;;  %v503_v29 = vpack.c.bf16 %v279_v28, %v278_v27  ;;  %v280_v30 = vld [vmem:[#allocation8 + $0x10] sm:$0xff]  ;;  %v281_v31 = vld [vmem:[#allocation8 + $0x18] sm:$0xff]  ;;  %v282_v33 = vld [vmem:[#allocation8 + $0x20] sm:$0xff] }
  0x50   :  { %492 = vmatprep.subr.bf16.mxu1 %v491_v13  ;;  %v507_v32 = vpack.c.bf16 %v281_v31, %v280_v30  ;;  %v283_v34 = vld [vmem:[#allocation8 + $0x28] sm:$0xff]  ;;  %v284_v35 = vld [vmem:[#allocation8 + $0x30] sm:$0xff]  ;;  %v285_v37 = vld [vmem:[#allocation8 + $0x38] sm:$0xff] }
  0x51   :  { %486 = vmatpush3.bf16.msra.mxu0 %v483_v6  ;;  %v511_v36 = vpack.c.bf16 %v283_v34, %v282_v33  ;;  %v515_v38 = vpack.c.bf16 %v285_v37, %v284_v35  ;;  %v398_v39 = vld [vmem:[%s805_s4] ss:$0 sm:$0xff]  ;;  %s622_s4 = scalar_lea.vmem %s382_s9, 256 }
  0x52   :  { %504 = vmatprep.subr.bf16.mxu0 %v503_v29  ;;  %v401_v46 = vld [vmem:[%s807_s6] ss:$0 sm:$0xff]  ;;  %p623_p4 = scmp.ne.s32.totalorder %s382_s9, %s622_s4  ;;  %p628_p6 = scmp.lt.s32.totalorder %s622_s4, %s622_s4 }
  0x53   :  { %494 = vmatpush3.bf16.msra.mxu1 %v491_v13 }
  0x54   :  { %439 = vmatmul.mubr.msk.f32.vlgmr.msra.gmra.mrb[0].mxu0 %vm95_vm0, %v83_v7  ;;  %496 = vmatprep.subr.bf16.mxu1 %v495_v17  ;;  %p629_p7 = por %p628_p6, %p627_p5 }
  0x55   :  { %506 = vmatpush3.bf16.msra.mxu0 %v503_v29 }
  0x56   :  { %508 = vmatprep.subr.bf16.mxu0 %v507_v32  ;;  %p630_p8 = pnand %p629_p7, %p623_p4 }
  0x57   :  { %498 = vmatpush3.bf16.msra.mxu1 %v495_v17 }
  0x58   :  { %500 = vmatprep.subr.bf16.mxu1 %v499_v19 }
  0x59   :  { %510 = vmatpush3.bf16.msra.mxu0 %v507_v32 }
  0x5a   :  { %512 = vmatprep.subr.bf16.mxu0 %v511_v36 }
  0x5b   :  { %502 = vmatpush3.bf16.msra.mxu1 %v499_v19 }
  0x5d   :  { %514 = vmatpush3.bf16.msra.mxu0 %v511_v36 }
  0x5e   :  { %516 = vmatprep.subr.bf16.mxu0 %v515_v38 }
  0x61   :  { %518 = vmatpush3.bf16.msra.mxu0 %v515_v38 }
 0x127   :  { %v440_v21 = vpop.f32.mrb[0].mxu0 }
 0x128   :  { %v174_v22 = vadd.f32 %v440_v21, %v395_v20  ;;  %v168_v23 = vpop.f32.mrb[1].mxu0 }
 0x129   :  { %v169_v24 = vadd.f32 %v395_v20, %v168_v23 }
 0x12b   :  { %526 = vtanh.f32 %v169_v24 }
 0x12c   :  { %528 = vtanh.f32 %v174_v22 }
 0x135   :  { %v527_v25 = vpop.eup %526 }
 0x136   :  { %v529_v26 = vpop.eup %528  ;;  %457 = vmatprep.mubr.msk.f32.mxu1 %vm194_vm1, %v527_v25 }
 0x137   :  { %458 = vmatmul.mubr.msk.f32.vlgmr.msra.gmra.mrb[0].mxu1 %vm194_vm1, %v529_v26 }
 0x20a   :  { %v459_v40 = vpop.f32.mrb[0].mxu1 }
 0x20b   :  { %v273_v41 = vadd.f32 %v459_v40, %v398_v39  ;;  %v267_v42 = vpop.f32.mrb[1].mxu1 }
 0x20c   :  { %v268_v43 = vadd.f32 %v398_v39, %v267_v42 }
 0x20e   :  { %530 = vtanh.f32 %v268_v43 }
 0x20f   :  { %532 = vtanh.f32 %v273_v41 }
 0x218   :  { %v531_v44 = vpop.eup %530 }
 0x219   :  { %v533_v45 = vpop.eup %532  ;;  %476 = vmatprep.mubr.msk.f32.mxu0 %vm194_vm1, %v531_v44 }
 0x21a   :  { %477 = vmatmul.mubr.msk.f32.vlgmr.msra.gmra.mrb[2].mxu0 %vm194_vm1, %v533_v45 }
 0x2ed   :  { %v478_v47 = vpop.f32.mrb[2].mxu0 }
 0x2ee   :  { %v371_v48 = vadd.f32 %v478_v47, %v401_v46  ;;  %v365_v49 = vpop.f32.mrb[3].mxu0 }
 0x2ef   :  { %v366_v50 = vadd.f32 %v401_v46, %v365_v49 }
 0x2f0   :  { %375 = vst [vmem:[#allocation10 + $0x8] sm:$0xff] %v371_v48 }
 0x2f1   :  { %374 = vst [vmem:[#allocation10] sm:$0xff] %v366_v50 }
 0x2f2   :  { %633 = shalt.err (!%p630_p8)
}
 0x2f3   :  { %s634_s6 = scalar_lea.hbm %s808_s7, 256 }
 0x2f4   :  { %p635_p9 = scmp.ne.s32.totalorder %s808_s7, %s634_s6  ;;  %p638_p10 = scmp.lt.u32.totalorder %s634_s6, %s808_s7 }
 0x2f6   :  { %p640_p11 = pnand %p638_p10, %p635_p9 }
 0x2f8   :  { %643 = shalt.err (!%p640_p11)
}
 0x2f9   :  { %387 = dma.vmem_to_hbm [thread:$0]  %s382_s9, 256, %s808_s7, [#allocation4], %s654_s13, %s654_s13, %s655_s14  }
 0x2fa   :  { %650 = dma.done.wait [#allocation4], 256  }
 0x2fb   :  { %651 = vsyncadd [#allocation4], 4294967040 }
 0x2fc   :  { %391 = vsyncpa [#allocation3], 1 }
 0x2fd   :  { %392 = vsyncpa [#allocation6], 1 }
 0x2fe   :  { %393 = vsyncpa [#allocation9], 1 }
 0x2ff   :  { %394 = vsyncpa [#allocation4], 1 }

</bundles_post_ra>
